<compile_context>
chip_gen: v5e
topology: v5e:2x2
jax: 0.10.0
libtpu: 0.0.40
codegen_flags: <defaults>
</compile_context>

<pallas_src>
import functools

import jax
import jax.numpy as jnp
from jax.experimental import pallas as pl
from jax.experimental.pallas import tpu as pltpu

LANES = 128
MAX_TILE_ROWS = 4096            # (4096,128) f32 tile = 2 MiB per buffer
NUM_CORE_SPLITS = 2             # leading "parallel" grid axis (2 TCs on v7x; harmless elsewhere)
VMEM_LIMIT_BYTES = 32 * 1024 * 1024


def _round_down(x, m):
    return (x // m) * m


def _sublane_multiple(dtype):
    # Minimum second-minor multiple for the packed layout of this dtype.
    bits = jnp.dtype(dtype).itemsize * 8
    return max(8, (32 // max(bits, 1)) * 8)


def _focal_terms(p, t, *, gamma, binary_targets):
    """Per-element (1 - pt)**gamma * BCE (alpha is applied by the caller).

    binary_targets=True uses the 1-transcendental path, exact for t in {0,1}.
    binary_targets=False reproduces torch's general formula (3 transcendentals).
    """
    p = p.astype(jnp.float32)
    t = t.astype(jnp.float32)
    if binary_targets:
        pt = jnp.where(t != 0.0, p, 1.0 - p)
        bce = -jnp.maximum(jnp.log(pt), -100.0)          # torch clamps log at -100
        one_minus_pt = 1.0 - pt
    else:
        log_p = jnp.maximum(jnp.log(p), -100.0)
        log_1mp = jnp.maximum(jnp.log(1.0 - p), -100.0)
        bce = -(t * log_p + (1.0 - t) * log_1mp)
        one_minus_pt = 1.0 - jnp.exp(-bce)
    if float(gamma) == 2.0:
        modulator = one_minus_pt * one_minus_pt          # VPU, no pow
    else:
        modulator = jnp.maximum(one_minus_pt, 0.0) ** jnp.float32(gamma)
    return modulator * bce


def _focal_loss_kernel(p_ref, t_ref, out_ref, acc_ref, *, gamma, binary_targets):
    i = pl.program_id(1)

    @pl.when(i == 0)
    def _():
        acc_ref[...] = jnp.zeros_like(acc_ref)

    f = _focal_terms(p_ref[...], t_ref[...], gamma=gamma,
                     binary_targets=binary_targets)

    # VPU-only partial reduction: fold groups of 8 rows onto the (8,128) acc.
    rows = f.shape[0]
    acc_ref[...] += jnp.sum(f.reshape(rows // 8, 8, LANES), axis=0)

    @pl.when(i == pl.num_programs(1) - 1)
    def _():
        out_ref[0, 0] = jnp.sum(acc_ref[...])            # single cross-lane reduce


def focal_loss(inputs, targets, *, alpha=0.25, gamma=2.0, binary_targets=True):
    """Mean focal loss over probabilities (PyTorch FocalLoss: logits=False,
    reduction='elementwise_mean'). Returns a scalar f32.

    binary_targets=True (default) assumes targets are {0, 1} (segmentation
    masks) and enables the fast 1-transcendental path + bf16 target streaming.
    Pass binary_targets=False for soft/fractional targets (exact torch math).
    """
    assert inputs.shape == targets.shape
    n = int(inputs.size)
    assert n > 0

    p_flat = inputs.reshape(-1)                # contiguous flatten: free
    t_flat = targets.reshape(-1)
    if binary_targets and jnp.dtype(t_flat.dtype).itemsize > 2:
        # 0/1 targets are exactly representable in bf16 -> halve HBM traffic.
        t_flat = t_flat.astype(jnp.bfloat16)

    scale = jnp.float32(float(alpha) / n)      # alpha hoisted out of the kernel

    # Lane alignment: only if n % 128 != 0 do we materialise a padded copy.
    # Pad values (p=1, t=1) contribute exactly 0 to the focal-loss sum.
    rem = n % LANES
    if rem:
        pad = LANES - rem
        p_flat = jnp.pad(p_flat, (0, pad), constant_values=1)
        t_flat = jnp.pad(t_flat, (0, pad), constant_values=1)
    rows_full = p_flat.size // LANES

    sub_mult = max(_sublane_multiple(p_flat.dtype), _sublane_multiple(t_flat.dtype))
    tile_rows = min(MAX_TILE_ROWS, _round_down(rows_full, sub_mult))

    if tile_rows == 0:
        # Tiny input (less than one packed tile): plain JAX.
        total = jnp.sum(_focal_terms(p_flat, t_flat, gamma=gamma,
                                     binary_targets=binary_targets))
        return total * scale

    p2 = p_flat.reshape(rows_full, LANES)      # free reshape when n % 128 == 0
    t2 = t_flat.reshape(rows_full, LANES)

    num_blocks = rows_full // tile_rows
    splits = (NUM_CORE_SPLITS
              if (num_blocks >= NUM_CORE_SPLITS and num_blocks % NUM_CORE_SPLITS == 0)
              else 1)
    blocks_per_split = num_blocks // splits
    bulk_rows = num_blocks * tile_rows         # rows covered by the grid

    kernel = functools.partial(_focal_loss_kernel, gamma=float(gamma),
                               binary_targets=bool(binary_targets))

    in_spec = pl.BlockSpec((tile_rows, LANES),
                           lambda c, i: (c * blocks_per_split + i, 0))

    partial_sums = pl.pallas_call(
        kernel,
        out_shape=jax.ShapeDtypeStruct((splits, 1), jnp.float32),
        grid_spec=pltpu.PrefetchScalarGridSpec(
            num_scalar_prefetch=0,
            grid=(splits, blocks_per_split),
            in_specs=[in_spec, in_spec],
            out_specs=pl.BlockSpec((1, 1), lambda c, i: (c, 0),
                                   memory_space=pltpu.SMEM),
            scratch_shapes=[pltpu.VMEM((8, LANES), jnp.float32)],
        ),
        compiler_params=pltpu.CompilerParams(
            dimension_semantics=("parallel", "arbitrary"),
            vmem_limit_bytes=VMEM_LIMIT_BYTES),
    )(p2, t2)

    total = jnp.sum(partial_sums)

    # Row remainder (< 1 tile) never touched by the grid: cheap plain-JAX sum.
    if bulk_rows < rows_full:
        total = total + jnp.sum(_focal_terms(p2[bulk_rows:], t2[bulk_rows:],
                                             gamma=gamma,
                                             binary_targets=binary_targets))

    return total * scale


def _focal_loss_ref(inputs, targets, alpha=0.25, gamma=2.0):
    # Faithful port of the torch formula (general path).
    p = inputs.astype(jnp.float32)
    t = targets.astype(jnp.float32)
    log_p = jnp.maximum(jnp.log(p), -100.0)
    log_1mp = jnp.maximum(jnp.log(1.0 - p), -100.0)
    bce = -(t * log_p + (1.0 - t) * log_1mp)
    pt = jnp.exp(-bce)
    return jnp.mean(alpha * (1.0 - pt) ** gamma * bce)


if __name__ == "__main__":
    key = jax.random.PRNGKey(0)
    k1, k2, k3, k4 = jax.random.split(key, 4)

    # Case 1: small NCHW segmentation-style shapes (batch=2, channels=4, 16x16).
    B, C, H, W = 2, 4, 16, 16
    logits = jax.random.normal(k1, (B, C, H, W), dtype=jnp.float32)
    inputs = jax.nn.sigmoid(logits)                                  # probabilities
    targets = (jax.random.uniform(k2, (B, C, H, W)) > 0.5).astype(jnp.float32)

    ref = _focal_loss_ref(inputs, targets)

    loss = jax.block_until_ready(focal_loss(inputs, targets, alpha=0.25, gamma=2.0))
    assert jnp.allclose(loss, ref, rtol=1e-5, atol=1e-6), (loss, ref)

    # General (soft-target-safe) path, same data.
    loss_gen = jax.block_until_ready(focal_loss(inputs, targets, binary_targets=False))
    assert jnp.allclose(loss_gen, ref, rtol=1e-5, atol=1e-6), (loss_gen, ref)

    # Case 2: larger non-tile-multiple size (exercises the JAX row-tail path),
    # bf16 probabilities cast in-kernel, bf16 target streaming.
    B2, C2, H2, W2 = 2, 4, 200, 200
    logits2 = jax.random.normal(k3, (B2, C2, H2, W2), dtype=jnp.float32)
    inputs2 = jax.nn.sigmoid(logits2).astype(jnp.bfloat16)
    targets2 = (jax.random.uniform(k4, (B2, C2, H2, W2)) > 0.5).astype(jnp.float32)

    loss2 = jax.block_until_ready(focal_loss(inputs2, targets2))
    ref2 = _focal_loss_ref(inputs2, targets2)
    assert jnp.allclose(loss2, ref2, rtol=1e-4, atol=1e-6), (loss2, ref2)

    print("KERNEL_OK")
</pallas_src>

<mosaic_0001>
module attributes {stable_mosaic.version = 11 : i64} {
  func.func @_focal_loss_kernel(%arg0: i32, %arg1: i32, %arg2: memref<16x128xf32, #tpu.memory_space<vmem>>, %arg3: memref<16x128xbf16, #tpu.memory_space<vmem>>, %arg4: memref<1x1xf32, #tpu.memory_space<smem>>, %arg5: memref<8x128xf32, #tpu.memory_space<vmem>>) attributes {dimension_semantics = [#tpu.dimension_semantics<parallel>, #tpu.dimension_semantics<arbitrary>], iteration_bounds = array<i64: 1, 1>, scalar_prefetch = 0 : i64, scratch_operands = 1 : i64, tpu.core_type = #tpu.core_type<tc>, window_params = [{transform_indices = @transform_0, window_bounds = array<i64: 16, 128>}, {transform_indices = @transform_1, window_bounds = array<i64: 16, 128>}, {transform_indices = @transform_2, window_bounds = array<i64: 1, 1>}]} {
    %c0_i32 = arith.constant 0 : i32
    %0 = arith.cmpi eq, %arg1, %c0_i32 : i32
    %1 = arith.extui %0 : i1 to i32
    %c0_i32_0 = arith.constant 0 : i32
    %2 = arith.cmpi ne, %1, %c0_i32_0 : i32
    scf.if %2 {
      %cst_15 = arith.constant 0.000000e+00 : f32
      %28 = vector.broadcast %cst_15 : f32 to vector<8x128xf32>
      %c0_16 = arith.constant 0 : index
      %c0_17 = arith.constant 0 : index
      %29 = vector.load %arg5[%c0_16, %c0_17] : memref<8x128xf32, #tpu.memory_space<vmem>>, vector<8x128xf32>
      tpu.vector_store %arg5[%c0_16, %c0_17], %28 {strides = array<i32>} : memref<8x128xf32, #tpu.memory_space<vmem>>, vector<8x128xf32>,
    } else {
    }
    %c0 = arith.constant 0 : index
    %c0_1 = arith.constant 0 : index
    %3 = vector.load %arg2[%c0, %c0_1] : memref<16x128xf32, #tpu.memory_space<vmem>>, vector<16x128xf32>
    %c0_2 = arith.constant 0 : index
    %c0_3 = arith.constant 0 : index
    %4 = vector.load %arg3[%c0_2, %c0_3] : memref<16x128xbf16, #tpu.memory_space<vmem>>, vector<16x128xbf16>
    %5 = arith.extf %4 : vector<16x128xbf16> to vector<16x128xf32>
    %cst = arith.constant 0.000000e+00 : f32
    %6 = vector.broadcast %cst : f32 to vector<16x128xf32>
    %7 = arith.cmpf one, %5, %6 : vector<16x128xf32>
    %cst_4 = arith.constant 1.000000e+00 : f32
    %8 = vector.broadcast %cst_4 : f32 to vector<16x128xf32>
    %9 = arith.subf %8, %3 : vector<16x128xf32>
    %10 = arith.select %7, %3, %9 : vector<16x128xi1>, vector<16x128xf32>
    %11 = math.log %10 : vector<16x128xf32>
    %cst_5 = arith.constant -1.000000e+02 : f32
    %12 = vector.broadcast %cst_5 : f32 to vector<16x128xf32>
    %13 = arith.maximumf %11, %12 : vector<16x128xf32>
    %cst_6 = arith.constant 0.000000e+00 : f32
    %14 = vector.broadcast %cst_6 : f32 to vector<16x128xf32>
    %15 = arith.subf %14, %13 : vector<16x128xf32>
    %cst_7 = arith.constant 1.000000e+00 : f32
    %16 = vector.broadcast %cst_7 : f32 to vector<16x128xf32>
    %17 = arith.subf %16, %10 : vector<16x128xf32>
    %18 = arith.mulf %17, %17 : vector<16x128xf32>
    %19 = arith.mulf %18, %15 : vector<16x128xf32>
    %c0_8 = arith.constant 0 : index
    %c0_9 = arith.constant 0 : index
    %20 = vector.load %arg5[%c0_8, %c0_9] : memref<8x128xf32, #tpu.memory_space<vmem>>, vector<8x128xf32>
    %21 = vector.shape_cast %19 : vector<16x128xf32> to vector<2x8x128xf32>
    %cst_10 = arith.constant dense<0.000000e+00> : vector<8x128xf32>
    %22 = vector.multi_reduction <add>, %21, %cst_10 [0] : vector<2x8x128xf32> to vector<8x128xf32>
    %23 = arith.addf %20, %22 : vector<8x128xf32>
    %c0_11 = arith.constant 0 : index
    %c0_12 = arith.constant 0 : index
    %24 = vector.load %arg5[%c0_11, %c0_12] : memref<8x128xf32, #tpu.memory_space<vmem>>, vector<8x128xf32>
    tpu.vector_store %arg5[%c0_11, %c0_12], %23 {strides = array<i32>} : memref<8x128xf32, #tpu.memory_space<vmem>>, vector<8x128xf32>,
    %c0_i32_13 = arith.constant 0 : i32
    %25 = arith.cmpi eq, %arg1, %c0_i32_13 : i32
    %26 = arith.extui %25 : i1 to i32
    %c0_i32_14 = arith.constant 0 : i32
    %27 = arith.cmpi ne, %26, %c0_i32_14 : i32
    scf.if %27 {
      %c0_15 = arith.constant 0 : index
      %c0_16 = arith.constant 0 : index
      %28 = vector.load %arg5[%c0_15, %c0_16] : memref<8x128xf32, #tpu.memory_space<vmem>>, vector<8x128xf32>
      %29 = vector.shape_cast %28 : vector<8x128xf32> to vector<1x8x128xf32>
      %cst_17 = arith.constant dense<0.000000e+00> : vector<1xf32>
      %30 = vector.multi_reduction <add>, %29, %cst_17 [1, 2] : vector<1x8x128xf32> to vector<1xf32>
      %31 = vector.shape_cast %30 : vector<1xf32> to vector<1x1x1xf32>
      %32 = vector.extract %31[0, 0, 0] : f32 from vector<1x1x1xf32>
      %c0_18 = arith.constant 0 : index
      %c0_19 = arith.constant 0 : index
      %33 = memref.load %arg4[%c0_18, %c0_19] : memref<1x1xf32, #tpu.memory_space<smem>>
      memref.store %32, %arg4[%c0_18, %c0_19] : memref<1x1xf32, #tpu.memory_space<smem>>
    } else {
    }
    return
  }
  func.func @transform_0(%arg0: i32, %arg1: i32) -> (i32, i32) {
    %c1_i32 = arith.constant 1 : i32
    %0 = arith.muli %arg0, %c1_i32 : i32
    %1 = arith.addi %0, %arg1 : i32
    %c0_i32 = arith.constant 0 : i32
    %c0_i32_0 = arith.constant 0 : i32
    return %1, %c0_i32 : i32, i32
  }
  func.func @transform_1(%arg0: i32, %arg1: i32) -> (i32, i32) {
    %c1_i32 = arith.constant 1 : i32
    %0 = arith.muli %arg0, %c1_i32 : i32
    %1 = arith.addi %0, %arg1 : i32
    %c0_i32 = arith.constant 0 : i32
    %c0_i32_0 = arith.constant 0 : i32
    return %1, %c0_i32 : i32, i32
  }
  func.func @transform_2(%arg0: i32, %arg1: i32) -> (i32, i32) {
    %c0_i32 = arith.constant 0 : i32
    %c0_i32_0 = arith.constant 0 : i32
    return %arg0, %c0_i32 : i32, i32
  }
}

</mosaic_0001>

<bundles_post_ra>
// kernel: tpu_custom_call.1
= control target key start
LH: loop header
LB: loop body
LE: loop exit
PB: predicated region body
PF: predicated region fallthrough
CT: control target
= control target key end

     0   :  { %7 = vsyncpa [#allocation4], 0  ;;  %s237_s0 = inlined_call_operand.hbm [shape: f32[16,128], index: 0, kind: input, shape index: {}]   ;;  %s238_s1 = inlined_call_operand.hbm [shape: bf16[16,128], index: 1, kind: input, shape index: {}]   ;;  %s239_s2 = inlined_call_operand.hbm [shape: f32[1,1], index: 2, kind: output, shape index: {}]  }
   0x1   :  { %8 = vsyncpa [#allocation7], 0 }
   0x2   :  { %9 = vsyncpa [#allocation5], 0  ;;  %s18_s11 = sshll.u32 %s237_s0, 4  ;;  %s206_s12 = smov [#allocation3]   ;;  %s19_s11 = int_to_ptr.hbm [resolvable:$true] %s18_s11 }
   0x3   :  { %s20_s13 = sshll.u32 %s206_s12, 4  ;;  %s35_s16 = sshll.u32 %s238_s1, 4  ;;  %s21_s13 = int_to_ptr.vmem [resolvable:$true] %s20_s13  ;;  %s36_s16 = int_to_ptr.hbm [resolvable:$true] %s35_s16 }
   0x4   :  { %s207_s17 = smov 128   ;;  %s208_s18 = smov 8  }
   0x5   :  { %26 = dma.hbm_to_vmem [thread:$0]  %s19_s11, 256, %s21_s13, [#allocation4], %s207_s17, %s207_s17, %s208_s18  }
   0x6   :  { %s209_s19 = smov [#allocation6]   ;;  %s210_s21 = smov 64  }
   0x7   :  { %s37_s20 = sshll.u32 %s209_s19, 4  ;;  %s211_s22 = smov 4   ;;  %s38_s20 = int_to_ptr.vmem [resolvable:$true] %s37_s20 }
   0x8   :  { %43 = dma.hbm_to_vmem [thread:$0]  %s36_s16, 128, %s38_s20, [#allocation7], %s210_s21, %s210_s21, %s211_s22  }
   0x9   :  { %200 = dma.done.wait [#allocation4], 256  }
   0xa   :  { %201 = vsyncadd [#allocation4], 4294967040 }
   0xb   :  { %202 = dma.done.wait [#allocation7], 128  }
   0xc   :  { %203 = vsyncadd [#allocation7], 4294967168  ;;  %v61_v0 = vld [vmem:[#allocation3] sm:$0xff]  ;;  %v62_v1 = vld [vmem:[#allocation3 + $0x8] sm:$0xff]  ;;  %s111_s23 = sshll.u32 %s239_s2, 4  ;;  %s212_s25 = smov [#allocation8]   ;;  %s112_s23 = int_to_ptr.hbm [resolvable:$true] %s111_s23 }
   0xd   :  { %v124_v2 = vld [vmem:[#allocation6] sm:$0xff]   ;;  %v69_v5 = vsub.f32 1.0, %v61_v0  ;;  %v70_v6 = vsub.f32 1.0, %v62_v1 }
   0xe   :  { %v125_v3 = vunpack.c.l.bf16 %v124_v2  ;;  %v126_v4 = vunpack.c.h.bf16 %v124_v2 }
  0x10   :  { %vm67_vm0 = vcmp.ne.f32.partialorder %v125_v3, 0.0  ;;  %vm68_vm1 = vcmp.ne.f32.partialorder %v126_v4, 0.0 }
  0x11   :  { %v71_v7 = vsel %vm67_vm0, %v61_v0, %v69_v5  ;;  %v72_v8 = vsel %vm68_vm1, %v62_v1, %v70_v6 }
  0x12   :  { %136 = vlog2.f32 %v71_v7  ;;  %v81_v9 = vsub.f32 1.0, %v71_v7  ;;  %v82_v11 = vsub.f32 1.0, %v72_v8 }
  0x13   :  { %138 = vlog2.f32 %v72_v8 }
  0x14   :  { %v83_v16 = vmul.f32 %v81_v9, %v81_v9  ;;  %v84_v18 = vmul.f32 %v82_v11, %v82_v11 }
  0x18   :  { %v137_v10 = vpop.eup %136 }
  0x19   :  { %v139_v12 = vpop.eup %138  ;;  %v74_v13 = vmul.f32 0.6931472, %v137_v10 }
  0x1a   :  { %v76_v14 = vmul.f32 0.6931472, %v139_v12 }
  0x1b   :  { %v77_v15 = vmax.f32 %v74_v13, -100.0 }
  0x1c   :  { %v78_v17 = vmax.f32 %v76_v14, -100.0 }
  0x1d   :  { %v79_v19 = vsub.f32 0.0, %v77_v15 }
  0x1e   :  { %v80_v20 = vsub.f32 0.0, %v78_v17 }
  0x1f   :  { %v85_v21 = vmul.f32 %v83_v16, %v79_v19 }
  0x20   :  { %v86_v22 = vmul.f32 %v84_v18, %v80_v20 }
  0x22   :  { %v88_v23 = vadd.f32 %v86_v22, %v85_v21 }
  0x24   :  { %95 = vadd.xlane.f32.xlu0 %v88_v23 }
  0x97   :  { %v96_v24 = vpop.xlane.xlu0 %95 }
  0x98   :  { %v97_v25 = vrot.slane %v96_v24, 4 }
  0x9a   :  { %v98_v26 = vadd.f32 %v97_v25, %v96_v24 }
  0x9c   :  { %v99_v27 = vrot.slane %v98_v26, 2 }
  0x9e   :  { %v100_v28 = vadd.f32 %v99_v27, %v98_v26 }
  0xa0   :  { %v101_v29 = vrot.slane %v100_v28, 1 }
  0xa2   :  { %v102_v30 = vadd.f32 %v101_v29, %v100_v28 }
  0xa4   :  { %127 = vpush %v102_v30 }
  0xd5   :  { %s128_s24 = spop %127 }
  0xd6   :  { %105 = sst [smem:[#allocation8]] %s128_s24 }
  0xd7   :  { %114 = dma.smem_to_hbm %s212_s25, 16, %s112_s23, [#allocation5]  }
  0xd8   :  { %204 = dma.done.wait [#allocation5], 16  }
  0xd9   :  { %205 = vsyncadd [#allocation5], 4294967280 }
  0xda   :  { %119 = sfence }
  0xdb   :  { %120 = vsyncpa [#allocation4], 1 }
  0xdc   :  { %121 = vsyncpa [#allocation7], 1 }
  0xdd   :  { %122 = vsyncpa [#allocation5], 1 }

</bundles_post_ra>
